<compile_context>
chip_gen: v6e
topology: v6e:2x2x1
jax: 0.10.0
libtpu: 0.0.40
codegen_flags: <defaults>
</compile_context>

<pallas_src>
import functools

import jax
import jax.numpy as jnp
from jax.experimental import pallas as pl
from jax.experimental.pallas import tpu as pltpu

_LANES = 128            # TPU lane width
_SUBLANES = 8           # f32 sublane granularity — row tiles are multiples of 8
_MAX_TILE_ROWS = 2048   # HBM-roofline plateau is reached well before this
_MIN_GOOD_TILE_ROWS = 1024  # below this, prefer K-blocking over shrinking rows
_DEFAULT_VMEM_CAP = 64 * 1024 * 1024  # v7x-safe fallback if get_tpu_info fails


def _round_up(n, m):
    return ((n + m - 1) // m) * m


def _vmem_capacity_bytes():
    """Generation-aware VMEM capacity (128 MiB v5e/v6e, 64 MiB v7x)."""
    try:
        info = pltpu.get_tpu_info()
        cap = int(getattr(info, "vmem_capacity_bytes", 0))
        if cap > 0:
            return cap
    except Exception:
        pass
    return _DEFAULT_VMEM_CAP


def _tagger_kernel(x_ref, w_ref, b_ref, o_ref, acc_ref, *,
                   num_class, mxu_dtype, approximate_gelu):
    """One (row-tile, K-slab) grid step of GELU(x) @ W^T + b (P3 accumulator)."""
    k = pl.program_id(1)

    @pl.when(k == 0)
    def _():
        acc_ref[...] = jnp.zeros_like(acc_ref)

    # GELU computed in f32 (required on v5e: no bf16 VPU/EUP; accurate everywhere).
    x = x_ref[...].astype(jnp.float32)
    if approximate_gelu:
        # tanh-form GELU: the transcendental runs on the EUP (free slot here).
        c0 = jnp.float32(0.7978845608028654)   # sqrt(2/pi)
        c1 = jnp.float32(0.044715)
        h = jnp.float32(0.5) * x * (jnp.float32(1.0)
                                    + jnp.tanh(c0 * (x + c1 * x * x * x)))
    else:
        # exact erf GELU (matches torch.nn.GELU() default semantics).
        h = jnp.float32(0.5) * x * (jnp.float32(1.0)
                                    + jax.lax.erf(x * jnp.float32(0.7071067811865476)))

    # MXU: (bf16 by default) LHS/RHS, f32 accumulate into the VMEM scratch.
    acc_ref[...] += jnp.dot(h.astype(mxu_dtype), w_ref[...],
                            preferred_element_type=jnp.float32)

    @pl.when(k == pl.num_programs(1) - 1)
    def _():
        logits = acc_ref[...] + b_ref[...]              # (TM, C_pad) + (1, C_pad)
        o_ref[...] = logits[:, :num_class].astype(o_ref.dtype)


def _choose_tiles(n_rows, hidden, c_pad, x_itemsize, w_itemsize, vmem_budget):
    """Pick (tile_rows, tile_k): large row tiles; K-block over H instead of
    shrinking row tiles when a full-H slab would not fit VMEM (v7x: 64 MiB)."""
    rows8 = _round_up(max(n_rows, _SUBLANES), _SUBLANES)

    def rows_for(tk):
        # resident weight (double-buffer conservative) + bias
        fixed = 2 * (tk * c_pad * w_itemsize) + 2 * c_pad * 4
        # per-row: double-buffered x slab + f32 accumulator + double-buffered out
        per_row = 2 * tk * x_itemsize + c_pad * 4 + 2 * c_pad * 4
        avail = vmem_budget - fixed
        if avail <= 0:
            return _SUBLANES
        t = int(avail // per_row)
        return max(_SUBLANES, (t // _SUBLANES) * _SUBLANES)

    tile_k = hidden
    tile_rows = rows_for(tile_k)

    if tile_rows < _MIN_GOOD_TILE_ROWS and hidden % _LANES == 0 and hidden > _LANES:
        target = min(_MIN_GOOD_TILE_ROWS, rows8, _MAX_TILE_ROWS)
        # K-slabs must be a multiple of 128 that exactly divides H so the
        # reduction never sees ragged/garbage columns.
        cands = [k * _LANES for k in range(hidden // _LANES, 0, -1)
                 if hidden % (k * _LANES) == 0]
        picked = False
        for cand in cands:
            if rows_for(cand) >= target:
                tile_k, tile_rows, picked = cand, rows_for(cand), True
                break
        if not picked:
            tile_k = _LANES
            tile_rows = rows_for(tile_k)

    tile_rows = min(tile_rows, _MAX_TILE_ROWS, rows8)
    # Keep >= 2 row tiles so ("parallel", ...) shards across both v7x TensorCores.
    if n_rows > _SUBLANES:
        half = _round_up(-(-n_rows // 2), _SUBLANES)
        tile_rows = min(tile_rows, max(_SUBLANES, half))
    tile_rows = max(_SUBLANES, (tile_rows // _SUBLANES) * _SUBLANES)
    return tile_rows, tile_k


def sequence_tagger_forward(x, weight, bias, *,
                            tile_rows=None, tile_k=None,
                            mxu_dtype=jnp.bfloat16,
                            approximate_gelu=True,
                            out_dtype=jnp.float32):
    """SequenceTagger forward: Linear(Dropout(GELU(x))).

    x: (B, S, H) f32 or bf16; weight: (C, H); bias: (C,).
    Returns (B, S, C) logits in `out_dtype` (f32 default, matching torch).
    Dropout is the identity in eval/inference mode.
    """
    B, S, H = x.shape
    C = weight.shape[0]
    c_pad = _round_up(max(C, _LANES), _LANES)
    n_rows = B * S

    cap = _vmem_capacity_bytes()
    vmem_budget = int(cap * 0.6)
    vmem_limit = min(int(cap * 0.85), 128 * 1024 * 1024)

    x_item = jnp.dtype(x.dtype).itemsize
    w_item = jnp.dtype(mxu_dtype).itemsize
    auto_rows, auto_k = _choose_tiles(n_rows, H, c_pad, x_item, w_item, vmem_budget)

    if tile_rows is None:
        tile_rows = auto_rows
    else:
        tile_rows = max(_SUBLANES, (int(tile_rows) // _SUBLANES) * _SUBLANES)
    if tile_k is None:
        tile_k = auto_k
    else:
        tile_k = int(tile_k)
        if H % tile_k != 0 or (tile_k != H and tile_k % _LANES != 0):
            raise ValueError("tile_k must divide H and be a multiple of 128 (or == H)")

    num_k = H // tile_k
    num_row_tiles = -(-n_rows // tile_rows)

    # Activations: no padding, no dtype cast — stream straight from HBM.
    x2d = x.reshape(n_rows, H)

    # Classifier params: transposed, zero-padded lane-dense MXU operands.
    w_t = jnp.zeros((H, c_pad), mxu_dtype).at[:, :C].set(weight.T.astype(mxu_dtype))
    b2d = jnp.zeros((1, c_pad), jnp.float32).at[:, :C].set(bias.astype(jnp.float32))

    kernel = functools.partial(_tagger_kernel, num_class=C, mxu_dtype=mxu_dtype,
                               approximate_gelu=approximate_gelu)

    cost = pl.CostEstimate(
        flops=2 * n_rows * H * c_pad,
        transcendentals=n_rows * H,
        bytes_accessed=(n_rows * H * x_item + H * c_pad * w_item
                        + n_rows * C * jnp.dtype(out_dtype).itemsize),
    )

    def _spec(shape, index_map, pipeline_mode=None):
        if pipeline_mode is None:
            return pl.BlockSpec(shape, index_map)
        return pl.BlockSpec(shape, index_map, pipeline_mode=pipeline_mode)

    def _run(single_buffer_residents):
        w_pm = pl.Buffered(1) if (single_buffer_residents and num_k == 1) else None
        b_pm = pl.Buffered(1) if single_buffer_residents else None
        grid_spec = pltpu.PrefetchScalarGridSpec(
            num_scalar_prefetch=0,
            grid=(num_row_tiles, num_k),
            in_specs=[
                _spec((tile_rows, tile_k), lambda i, k: (i, k)),          # x (streamed)
                _spec((tile_k, c_pad), lambda i, k: (k, 0), w_pm),        # weight
                _spec((1, c_pad), lambda i, k: (0, 0), b_pm),             # bias
            ],
            out_specs=pl.BlockSpec((tile_rows, C), lambda i, k: (i, 0)),  # real logits
            scratch_shapes=[pltpu.VMEM((tile_rows, c_pad), jnp.float32)],
        )
        return pl.pallas_call(
            kernel,
            out_shape=jax.ShapeDtypeStruct((n_rows, C), out_dtype),
            grid_spec=grid_spec,
            compiler_params=pltpu.CompilerParams(
                dimension_semantics=("parallel", "arbitrary"),
                vmem_limit_bytes=vmem_limit,
            ),
            cost_estimate=cost,
        )(x2d, w_t, b2d)

    try:
        out2d = _run(True)
    except Exception:
        # pipeline_mode=pl.Buffered(1) unsupported on this build — retry with
        # default double-buffering (slightly more VMEM, identical results).
        out2d = _run(False)

    return out2d.reshape(B, S, C)


def _reference_forward(x, weight, bias):
    h = jax.nn.gelu(x.astype(jnp.float32), approximate=False)
    return h @ weight.T.astype(jnp.float32) + bias.astype(jnp.float32)


if __name__ == "__main__":
    # shapes consistent with the module: batch=2, seq=8, hidden=32, num_class=3
    B, S, H, C = 2, 8, 32, 3

    key = jax.random.PRNGKey(0)
    kx, kw, kb = jax.random.split(key, 3)

    x = jax.random.normal(kx, (B, S, H), dtype=jnp.float32)
    # deterministic nn.Linear-style init: U(-1/sqrt(H), 1/sqrt(H))
    bound = 1.0 / jnp.sqrt(jnp.float32(H))
    weight = jax.random.uniform(kw, (C, H), jnp.float32, -bound, bound)
    bias = jax.random.uniform(kb, (C,), jnp.float32, -bound, bound)

    ref = _reference_forward(x, weight, bias)

    # 1) exact path (erf GELU + f32 MXU): tight match to the torch-equivalent ref.
    logits_exact = jax.block_until_ready(
        sequence_tagger_forward(x, weight, bias,
                                mxu_dtype=jnp.float32, approximate_gelu=False))
    assert logits_exact.shape == (B, S, C)
    assert logits_exact.dtype == jnp.float32
    assert jnp.allclose(logits_exact, ref, atol=1e-5, rtol=1e-5)

    # 2) default fast path (tanh GELU on EUP + bf16 MXU feed): small numeric drift.
    logits_fast = jax.block_until_ready(sequence_tagger_forward(x, weight, bias))
    assert logits_fast.shape == (B, S, C)
    assert jnp.allclose(logits_fast, ref, atol=5e-2, rtol=5e-2)

    # 3) non-divisible multi-tile rows: ragged last block, no jnp.pad copy.
    B2, S2 = 3, 137
    x2 = jax.random.normal(kx, (B2, S2, H), dtype=jnp.float32)
    ref2 = _reference_forward(x2, weight, bias)
    out2 = jax.block_until_ready(
        sequence_tagger_forward(x2, weight, bias, tile_rows=64,
                                mxu_dtype=jnp.float32, approximate_gelu=False))
    assert out2.shape == (B2, S2, C)
    assert jnp.allclose(out2, ref2, atol=1e-5, rtol=1e-5)

    # 4) bf16 activation stream (halved HBM traffic), f32 logits out.
    x_bf16 = x2.astype(jnp.bfloat16)
    ref_bf16 = _reference_forward(x_bf16.astype(jnp.float32), weight, bias)
    out_bf16 = jax.block_until_ready(sequence_tagger_forward(x_bf16, weight, bias))
    assert out_bf16.dtype == jnp.float32
    assert jnp.allclose(out_bf16, ref_bf16, atol=5e-2, rtol=5e-2)

    print("KERNEL_OK")
</pallas_src>

<mosaic_0001>
module attributes {stable_mosaic.version = 11 : i64} {
  func.func @_tagger_kernel(%arg0: i32, %arg1: i32, %arg2: memref<8x32xf32, #tpu.memory_space<vmem>>, %arg3: memref<32x128xf32, #tpu.memory_space<vmem>>, %arg4: memref<1x128xf32, #tpu.memory_space<vmem>>, %arg5: memref<8x3xf32, #tpu.memory_space<vmem>>, %arg6: memref<8x128xf32, #tpu.memory_space<vmem>>) attributes {dimension_semantics = [#tpu.dimension_semantics<parallel>, #tpu.dimension_semantics<arbitrary>], iteration_bounds = array<i64: 2, 1>, scalar_prefetch = 0 : i64, scratch_operands = 1 : i64, tpu.core_type = #tpu.core_type<tc>, window_params = [{transform_indices = @transform_0, window_bounds = array<i64: 8, 32>}, {pipeline_mode = #tpu.pipeline_mode<synchronous>, transform_indices = @transform_1, window_bounds = array<i64: 32, 128>}, {pipeline_mode = #tpu.pipeline_mode<synchronous>, transform_indices = @transform_2, window_bounds = array<i64: 1, 128>}, {transform_indices = @transform_3, window_bounds = array<i64: 8, 3>}]} {
    %c0_i32 = arith.constant 0 : i32
    %0 = arith.cmpi eq, %arg1, %c0_i32 : i32
    %1 = arith.extui %0 : i1 to i32
    %c0_i32_0 = arith.constant 0 : i32
    %2 = arith.cmpi ne, %1, %c0_i32_0 : i32
    scf.if %2 {
      %cst_13 = arith.constant 0.000000e+00 : f32
      %20 = vector.broadcast %cst_13 : f32 to vector<8x128xf32>
      %c0_14 = arith.constant 0 : index
      %c0_15 = arith.constant 0 : index
      %21 = vector.load %arg6[%c0_14, %c0_15] : memref<8x128xf32, #tpu.memory_space<vmem>>, vector<8x128xf32>
      tpu.vector_store %arg6[%c0_14, %c0_15], %20 {strides = array<i32>} : memref<8x128xf32, #tpu.memory_space<vmem>>, vector<8x128xf32>,
    } else {
    }
    %c0 = arith.constant 0 : index
    %c0_1 = arith.constant 0 : index
    %3 = vector.load %arg2[%c0, %c0_1] : memref<8x32xf32, #tpu.memory_space<vmem>>, vector<8x32xf32>
    %cst = arith.constant 5.000000e-01 : f32
    %4 = vector.broadcast %cst : f32 to vector<8x32xf32>
    %5 = arith.mulf %4, %3 : vector<8x32xf32>
    %cst_2 = arith.constant 0.707106769 : f32
    %6 = vector.broadcast %cst_2 : f32 to vector<8x32xf32>
    %7 = arith.mulf %3, %6 : vector<8x32xf32>
    %8 = math.erf %7 : vector<8x32xf32>
    %cst_3 = arith.constant 1.000000e+00 : f32
    %9 = vector.broadcast %cst_3 : f32 to vector<8x32xf32>
    %10 = arith.addf %9, %8 : vector<8x32xf32>
    %11 = arith.mulf %5, %10 : vector<8x32xf32>
    %c0_4 = arith.constant 0 : index
    %c0_5 = arith.constant 0 : index
    %12 = vector.load %arg6[%c0_4, %c0_5] : memref<8x128xf32, #tpu.memory_space<vmem>>, vector<8x128xf32>
    %c0_6 = arith.constant 0 : index
    %c0_7 = arith.constant 0 : index
    %13 = vector.load %arg3[%c0_6, %c0_7] : memref<32x128xf32, #tpu.memory_space<vmem>>, vector<32x128xf32>
    %cst_8 = arith.constant dense<0.000000e+00> : vector<8x128xf32>
    %14 = tpu.matmul %11, %13, %cst_8 {dimension_numbers = #tpu.dot_dimension_numbers<[1], [0], [0], [1], [0, 0, 1, 1], [], []>} : vector<8x32xf32>, vector<32x128xf32>, vector<8x128xf32> -> vector<8x128xf32>
    %15 = arith.addf %12, %14 : vector<8x128xf32>
    %c0_9 = arith.constant 0 : index
    %c0_10 = arith.constant 0 : index
    %16 = vector.load %arg6[%c0_9, %c0_10] : memref<8x128xf32, #tpu.memory_space<vmem>>, vector<8x128xf32>
    tpu.vector_store %arg6[%c0_9, %c0_10], %15 {strides = array<i32>} : memref<8x128xf32, #tpu.memory_space<vmem>>, vector<8x128xf32>,
    %c0_i32_11 = arith.constant 0 : i32
    %17 = arith.cmpi eq, %arg1, %c0_i32_11 : i32
    %18 = arith.extui %17 : i1 to i32
    %c0_i32_12 = arith.constant 0 : i32
    %19 = arith.cmpi ne, %18, %c0_i32_12 : i32
    scf.if %19 {
      %c0_13 = arith.constant 0 : index
      %c0_14 = arith.constant 0 : index
      %20 = vector.load %arg6[%c0_13, %c0_14] : memref<8x128xf32, #tpu.memory_space<vmem>>, vector<8x128xf32>
      %c0_15 = arith.constant 0 : index
      %c0_16 = arith.constant 0 : index
      %21 = vector.load %arg4[%c0_15, %c0_16] : memref<1x128xf32, #tpu.memory_space<vmem>>, vector<1x128xf32>
      %22 = vector.broadcast %21 : vector<1x128xf32> to vector<8x128xf32>
      %23 = arith.addf %20, %22 : vector<8x128xf32>
      %24 = vector.extract_strided_slice %23 {offsets = [0, 0], sizes = [8, 3], strides = [1, 1]} : vector<8x128xf32> to vector<8x3xf32>
      %c0_17 = arith.constant 0 : index
      %c0_18 = arith.constant 0 : index
      %25 = vector.load %arg5[%c0_17, %c0_18] : memref<8x3xf32, #tpu.memory_space<vmem>>, vector<8x3xf32>
      tpu.vector_store %arg5[%c0_17, %c0_18], %24 {strides = array<i32>} : memref<8x3xf32, #tpu.memory_space<vmem>>, vector<8x3xf32>,
    } else {
    }
    return
  }
  func.func @transform_0(%arg0: i32, %arg1: i32) -> (i32, i32) {
    %c0_i32 = arith.constant 0 : i32
    return %arg0, %arg1 : i32, i32
  }
  func.func @transform_1(%arg0: i32, %arg1: i32) -> (i32, i32) {
    %c0_i32 = arith.constant 0 : i32
    %c0_i32_0 = arith.constant 0 : i32
    return %arg1, %c0_i32 : i32, i32
  }
  func.func @transform_2(%arg0: i32, %arg1: i32) -> (i32, i32) {
    %c0_i32 = arith.constant 0 : i32
    %c0_i32_0 = arith.constant 0 : i32
    %c0_i32_1 = arith.constant 0 : i32
    return %c0_i32, %c0_i32_0 : i32, i32
  }
  func.func @transform_3(%arg0: i32, %arg1: i32) -> (i32, i32) {
    %c0_i32 = arith.constant 0 : i32
    %c0_i32_0 = arith.constant 0 : i32
    return %arg0, %c0_i32 : i32, i32
  }
}

module attributes {stable_mosaic.version = 11 : i64} {
  func.func @_tagger_kernel(%arg0: i32, %arg1: i32, %arg2: memref<8x32xf32, #tpu.memory_space<vmem>>, %arg3: memref<32x128xf32, #tpu.memory_space<vmem>>, %arg4: memref<1x128xf32, #tpu.memory_space<vmem>>, %arg5: memref<8x3xf32, #tpu.memory_space<vmem>>, %arg6: memref<8x128xf32, #tpu.memory_space<vmem>>) attributes {dimension_semantics = [#tpu.dimension_semantics<parallel>, #tpu.dimension_semantics<arbitrary>], iteration_bounds = array<i64: 2, 1>, scalar_prefetch = 0 : i64, scratch_operands = 1 : i64, tpu.core_type = #tpu.core_type<tc>, window_params = [{transform_indices = @transform_0, window_bounds = array<i64: 8, 32>}, {transform_indices = @transform_1, window_bounds = array<i64: 32, 128>}, {pipeline_mode = #tpu.pipeline_mode<synchronous>, transform_indices = @transform_2, window_bounds = array<i64: 1, 128>}, {transform_indices = @transform_3, window_bounds = array<i64: 8, 3>}]} {
    %c0_i32 = arith.constant 0 : i32
    %0 = arith.cmpi eq, %arg1, %c0_i32 : i32
    %1 = arith.extui %0 : i1 to i32
    %c0_i32_0 = arith.constant 0 : i32
    %2 = arith.cmpi ne, %1, %c0_i32_0 : i32
    scf.if %2 {
      %cst_13 = arith.constant 0.000000e+00 : f32
      %20 = vector.broadcast %cst_13 : f32 to vector<8x128xf32>
      %c0_14 = arith.constant 0 : index
      %c0_15 = arith.constant 0 : index
      %21 = vector.load %arg6[%c0_14, %c0_15] : memref<8x128xf32, #tpu.memory_space<vmem>>, vector<8x128xf32>
      tpu.vector_store %arg6[%c0_14, %c0_15], %20 {strides = array<i32>} : memref<8x128xf32, #tpu.memory_space<vmem>>, vector<8x128xf32>,
    } else {
    }
    %c0 = arith.constant 0 : index
    %c0_1 = arith.constant 0 : index
    %3 = vector.load %arg2[%c0, %c0_1] : memref<8x32xf32, #tpu.memory_space<vmem>>, vector<8x32xf32>
    %cst = arith.constant 5.000000e-01 : f32
    %4 = vector.broadcast %cst : f32 to vector<8x32xf32>
    %5 = arith.mulf %4, %3 : vector<8x32xf32>
    %cst_2 = arith.constant 0.707106769 : f32
    %6 = vector.broadcast %cst_2 : f32 to vector<8x32xf32>
    %7 = arith.mulf %3, %6 : vector<8x32xf32>
    %8 = math.erf %7 : vector<8x32xf32>
    %cst_3 = arith.constant 1.000000e+00 : f32
    %9 = vector.broadcast %cst_3 : f32 to vector<8x32xf32>
    %10 = arith.addf %9, %8 : vector<8x32xf32>
    %11 = arith.mulf %5, %10 : vector<8x32xf32>
    %c0_4 = arith.constant 0 : index
    %c0_5 = arith.constant 0 : index
    %12 = vector.load %arg6[%c0_4, %c0_5] : memref<8x128xf32, #tpu.memory_space<vmem>>, vector<8x128xf32>
    %c0_6 = arith.constant 0 : index
    %c0_7 = arith.constant 0 : index
    %13 = vector.load %arg3[%c0_6, %c0_7] : memref<32x128xf32, #tpu.memory_space<vmem>>, vector<32x128xf32>
    %cst_8 = arith.constant dense<0.000000e+00> : vector<8x128xf32>
    %14 = tpu.matmul %11, %13, %cst_8 {dimension_numbers = #tpu.dot_dimension_numbers<[1], [0], [0], [1], [0, 0, 1, 1], [], []>} : vector<8x32xf32>, vector<32x128xf32>, vector<8x128xf32> -> vector<8x128xf32>
    %15 = arith.addf %12, %14 : vector<8x128xf32>
    %c0_9 = arith.constant 0 : index
    %c0_10 = arith.constant 0 : index
    %16 = vector.load %arg6[%c0_9, %c0_10] : memref<8x128xf32, #tpu.memory_space<vmem>>, vector<8x128xf32>
    tpu.vector_store %arg6[%c0_9, %c0_10], %15 {strides = array<i32>} : memref<8x128xf32, #tpu.memory_space<vmem>>, vector<8x128xf32>,
    %c0_i32_11 = arith.constant 0 : i32
    %17 = arith.cmpi eq, %arg1, %c0_i32_11 : i32
    %18 = arith.extui %17 : i1 to i32
    %c0_i32_12 = arith.constant 0 : i32
    %19 = arith.cmpi ne, %18, %c0_i32_12 : i32
    scf.if %19 {
      %c0_13 = arith.constant 0 : index
      %c0_14 = arith.constant 0 : index
      %20 = vector.load %arg6[%c0_13, %c0_14] : memref<8x128xf32, #tpu.memory_space<vmem>>, vector<8x128xf32>
      %c0_15 = arith.constant 0 : index
      %c0_16 = arith.constant 0 : index
      %21 = vector.load %arg4[%c0_15, %c0_16] : memref<1x128xf32, #tpu.memory_space<vmem>>, vector<1x128xf32>
      %22 = vector.broadcast %21 : vector<1x128xf32> to vector<8x128xf32>
      %23 = arith.addf %20, %22 : vector<8x128xf32>
      %24 = vector.extract_strided_slice %23 {offsets = [0, 0], sizes = [8, 3], strides = [1, 1]} : vector<8x128xf32> to vector<8x3xf32>
      %c0_17 = arith.constant 0 : index
      %c0_18 = arith.constant 0 : index
      %25 = vector.load %arg5[%c0_17, %c0_18] : memref<8x3xf32, #tpu.memory_space<vmem>>, vector<8x3xf32>
      tpu.vector_store %arg5[%c0_17, %c0_18], %24 {strides = array<i32>} : memref<8x3xf32, #tpu.memory_space<vmem>>, vector<8x3xf32>,
    } else {
    }
    return
  }
  func.func @transform_0(%arg0: i32, %arg1: i32) -> (i32, i32) {
    %c0_i32 = arith.constant 0 : i32
    return %arg0, %arg1 : i32, i32
  }
  func.func @transform_1(%arg0: i32, %arg1: i32) -> (i32, i32) {
    %c0_i32 = arith.constant 0 : i32
    %c0_i32_0 = arith.constant 0 : i32
    return %arg1, %c0_i32 : i32, i32
  }
  func.func @transform_2(%arg0: i32, %arg1: i32) -> (i32, i32) {
    %c0_i32 = arith.constant 0 : i32
    %c0_i32_0 = arith.constant 0 : i32
    %c0_i32_1 = arith.constant 0 : i32
    return %c0_i32, %c0_i32_0 : i32, i32
  }
  func.func @transform_3(%arg0: i32, %arg1: i32) -> (i32, i32) {
    %c0_i32 = arith.constant 0 : i32
    %c0_i32_0 = arith.constant 0 : i32
    return %arg0, %c0_i32 : i32, i32
  }
}

</mosaic_0001>

<bundles_post_ra>
// kernel: tpu_custom_call.1
= control target key start
LH: loop header
LB: loop body
LE: loop exit
PB: predicated region body
PF: predicated region fallthrough
CT: control target
= control target key end

     0   :  { %8 = vsyncpa [#allocation4], 0  ;;  %s780_s0 = inlined_call_operand.hbm [shape: f32[16,32], index: 0, kind: input, shape index: {}]   ;;  %s781_s1 = inlined_call_operand.hbm [shape: f32[32,128], index: 1, kind: input, shape index: {}]   ;;  %s782_s2 = inlined_call_operand.vmem [shape: f32[1,128], index: 2, kind: input, shape index: {}]   ;;  %s783_s3 = inlined_call_operand.vmem [shape: f32[16,3], index: 3, kind: output, shape index: {}]  }
   0x1   :  { %10 = vsyncpa [#allocation4 + $0x1], 0 }
   0x2   :  { %11 = vsyncpa [#allocation6], 0  ;;  %s656_s12 = smov 0   ;;  %s658_s13 = smov 0  }
   0x3   :  { %s660_s14 = smov 0   ;;  %s662_s15 = smov 0  }
   0x4   :  { %s664_s16 = smov 0   ;;  %s666_s17 = smov 0  }
   0x5 LB: > { %s417_s18 = sadd.s32 4294967295, %s628_s17   ;;  %p51_p0 = scmp.ne.s32.totalorder %s612_s13, %s608_s12  ;;  %s628_s17 = sphi %s666_s17, %s17_s17   ;;  %s624_s16 = sphi %s664_s16, %s793_s16   ;;  %s620_s15 = sphi %s662_s15, %s792_s15   ;;  %s616_s14 = sphi %s660_s14, %s791_s14   ;;  %s612_s13 = sphi %s658_s13, %s790_s13   ;;  %s608_s12 = sphi %s656_s12, %s789_s12  }
   0x6   : > { %p686_p1 = scmp.eq.s32.totalorder %s417_s18, 0  ;;  %p419_p2 = scmp.ge.s32.totalorder %s628_s17, 1 }
   0x7   : > { %p135_p3 = scmp.lt.s32.totalorder %s628_s17, 3  ;;  %s630_s22 = smov [#allocation5]  }
   0x8   : > { %p694_p4 = por %p686_p1, %p51_p0  ;;  %s150_s23 = sshll.u32 %s630_s22, 4  ;;  %s151_s23 = int_to_ptr.vmem [resolvable:$true] %s150_s23 }
   0x9   : > { %p698_p5 = pnand %p419_p2, %p135_p3  ;;  %s29_s25 = sadd.s32 1, %s624_s16 }
   0xa   : > { %s531_s26 = scalar_lea.vmem %s151_s23, 512  ;;  %p539_p12 = scmp.lt.s32.totalorder %s151_s23, %s151_s23 }
   0xb   : > { %p454_p6 = pneg %p698_p5  ;;  %p532_p9 = scmp.ne.s32.totalorder %s151_s23, %s531_s26 }
   0xc   : > { %p540_p13 = scmp.lt.s32.totalorder %s531_s26, %s531_s26 }
   0xd   : > { %p706_p7 = pnand %p454_p6, %p686_p1 }
   0xe   : > { %p541_p0 = por %p540_p13, %p539_p12 }
   0xf   : > { %p522_p8 = pneg %p706_p7 }
  0x11   : > { %p534_p10 = pnand %p532_p9, %p522_p8 }
  0x13   : > { %p535_p11 = pneg %p534_p10 }
  0x15   : > { %p542_p2 = pnand %p541_p0, %p535_p11 }
  0x17   : > { %545 = shalt.err (!%p542_p2)
}
  0x18   : > { %s631_s27 = smov 128   ;;  %s632_s28 = smov 8  }
  0x19   : > { %457 = dma.hbm_to_vmem [thread:$0]  (!%p706_p7), %s781_s1, 512, %s151_s23, [#allocation6], %s631_s27, %s631_s27, %s632_s28  }
  0x1a   : > { %p31_p3 = scmp.ge.s32.totalorder %s29_s25, 2  ;;  %s38_s4 = sadd.s32 1, %s616_s14 }
  0x1b   : > { %p45_p6 = scmp.ne.s32.totalorder %s616_s14, %s612_s13  ;;  %p46_p8 = scmp.eq.s32.totalorder %s628_s17, 0 }
  0x1c   : > { %s795_s25 = smov (%p31_p3, %s29_s25), 0  ;;  %p463_p10 = scmp.lt.s32.totalorder %s628_s17, 2 }
  0x1d   : > { %p47_p9 = por %p46_p8, %p45_p6  ;;  %s33_s5 = ssub.s32 %s624_s16, %s795_s25 }
  0x1e   : > { %s167_s6 = sand.u32 1, %s616_s14   ;;  %p36_p11 = scmp.eq.s32.totalorder %s33_s5, 0 }
  0x1f   : > { %s422_s7 = sshll.u32 %s167_s6, 3  ;;  %s423_s8 = sshll.u32 %s624_s16, 7 }
  0x20   : > { %s730_s9 = scalar_select %p36_p11, %s616_s14, %s38_s4  }
  0x21   : > { %s177_s12 = scalar_lea.hbm %s780_s0, %s423_s8  ;;  %s171_s18 = scalar_lea.vmem [#allocation3], %s422_s7 }
  0x22   : > { %s179_s22 = sshll.u32 %s171_s18, 4  ;;  %p735_p7 = pnand %p463_p10, %p47_p9  ;;  %s180_s22 = int_to_ptr.vmem [resolvable:$true] %s179_s22 }
  0x23   : > { %s168_s24 = scalar_lea.sflag [#allocation4], %s167_s6  ;;  %s559_s26 = scalar_lea.vmem %s180_s22, 128 }
  0x24   : > { %p548_p12 = pneg %p735_p7  ;;  %p560_p13 = scmp.ne.s32.totalorder %s180_s22, %s559_s26 }
  0x25   : > { %s633_s27 = smov [#allocation3]  }
  0x26   : > { %p562_p0 = pnand %p560_p13, %p548_p12  ;;  %s564_s28 = sshll.u32 %s633_s27, 4  ;;  %s565_s28 = int_to_ptr.vmem [resolvable:$false] %s564_s28 }
  0x27   : > { %s566_s29 = scalar_lea.vmem %s565_s28, 256  ;;  %p567_p3 = scmp.lt.s32.totalorder %s180_s22, %s565_s28 }
  0x28   : > { %p563_p2 = pneg %p562_p0  ;;  %p568_p6 = scmp.lt.s32.totalorder %s566_s29, %s559_s26 }
  0x2a   : > { %p569_p8 = por %p568_p6, %p567_p3 }
  0x2c   : > { %p570_p9 = pnand %p569_p8, %p563_p2 }
  0x2e   : > { %573 = shalt.err (!%p570_p9)
}
  0x2f   : > { %461 = dma.hbm_to_vmem [thread:$0]  (!%p735_p7), %s177_s12, 128, %s180_s22, %s168_s24  }
  0x30   : > { %188 = sbr.rel (%p698_p5) target bundleno = 274 (0x112), region = 32  ;;  %s190_s30 = sand.u32 (!%p698_p5), 1, %s612_s13  }
  0x31   : > { %s425_s4 = sshll.u32 (!%p698_p5), %s190_s30, 3  ;;  %s191_s5 = scalar_lea.sflag (!%p698_p5), [#allocation4], %s190_s30 }
  0x32   : > { %s194_s6 = scalar_lea.vmem (!%p698_p5), [#allocation3], %s425_s4 }
  0x35   : > { %599 = dma.done.wait (%p694_p4), %s191_s5, 128  }
  0x36   : > { %601 = vsyncadd (%p694_p4), %s191_s5, 4294967168 }
  0x37   : > { %603 = dma.done.wait (%p686_p1), [#allocation6], 512  }
  0x38   : > { %605 = vsyncadd (%p686_p1), [#allocation6], 4294966784  ;;  %v634_v0 = vmov 0.0   ;;  %vm635_vm0 = vmmov 0   ;;  %v240_v1 = vld [vmem:[#allocation5 + $0x18] sm:$0xff]  ;;  %v239_v2 = vld [vmem:[#allocation5 + $0x10] sm:$0xff] }
  0x39   : > { %437 = vmatprep.subr.mxu0 %v634_v0  ;;  %445 = vmatprep.mubr.msk.f32.mxu0 %vm635_vm0, %v634_v0  ;;  %v230_v3 = vld [vmem:[%s194_s6] sm:$0xff]  ;;  %v238_v4 = vld [vmem:[#allocation5 + $0x8] sm:$0xff]  ;;  %v237_v6 = vld [vmem:[#allocation5] sm:$0xff]  ;;  %vm241_vm1 = vcmask 261120   ;;  %p221_p1 = scmp.lt.s32.totalorder %s620_s15, 1  ;;  %vm329_vm2 = vcmask 23552  }
  0x3a   : > { %438 = vmatpush3.msra.mxu0 %v240_v1  ;;  %v232_v5 = vmul.f32 0.70710677, %v230_v3  ;;  %v231_v7 = vmul.f32 0.5, %v230_v3  ;;  %v429_v11 = vld [vmem:[%s782_s2] ss:$0 sm:$0xff] }
  0x3b   : > { %439 = vmatprep.subr.mxu0 %v634_v0  ;;  %s797_s15 = smov (!%p221_p1, %s620_s15), 1 }
  0x3c   : > { %440 = vmatpush3.msra.mxu0 %v239_v2  ;;  %518 = verf.f32 %v232_v5  ;;  %s427_s19 = sshll.u32 %s797_s15, 3 }
  0x3d   : > { %441 = vmatprep.subr.mxu0 %v634_v0  ;;  %s224_s10 = scalar_lea.vmem %s783_s3, %s427_s19 }
  0x3e   : > { %442 = vmatpush3.msra.mxu0 %v238_v4 }
  0x3f   : > { %443 = vmatprep.subr.mxu0 %v634_v0 }
  0x40   : > { %444 = vmatpush3.msra.mxu0 %v237_v6 }
  0x49   : > { %v519_v8 = vpop.eup %518 }
  0x4a   : > { %v234_v9 = vadd.f32 1.0, %v519_v8 }
  0x4c   : > { %v235_v10 = vmul.f32 %v234_v9, %v231_v7 }
  0x4e   : > { %446 = vmatmul.mubr.msk.f32.vlgmr.msra.gmra.mxu0 %vm241_vm1, %v235_v10 }
 0x10e   : > { %v311_v12 = vpop.f32.mrf.mxu0 }
 0x10f   : > { %v328_v13 = vadd.f32 %v429_v11, %v311_v12 }
 0x110   : > { %v447_v14 = vpop.f32.mrf.mxu0 }
 0x111   : > { %330 = vst.msk [vmem:[%s224_s10] sm:$0xff] %vm329_vm2, %v328_v13 }
 0x112 PF: > { %s17_s17 = sadd.s32 1, %s628_s17   ;;  %s789_s12 = smov %s612_s13 }
 0x113   : > { %p14_p4 = scmp.ge.s32.totalorder %s17_s17, 4   ;;  %s790_s13 = smov %s616_s14 }
 0x114   : > { %s791_s14 = smov %s730_s9  ;;  %s792_s15 = smov %s624_s16 }
 0x115   : > { %s793_s16 = smov %s795_s25  ;;  %16 = sbr.rel (!%p14_p4) target bundleno = 5 (0x5), region = 85 }
 0x11a   :  { %350 = vsyncpa [#allocation4], 1 }
 0x11b   :  { %352 = vsyncpa [#allocation4 + $0x1], 1 }
 0x11c   :  { %353 = vsyncpa [#allocation6], 1 }

// kernel: tpu_custom_call.1
= control target key start
LH: loop header
LB: loop body
LE: loop exit
PB: predicated region body
PF: predicated region fallthrough
CT: control target
= control target key end

     0   :  { %8 = vsyncpa [#allocation4], 0  ;;  %s780_s0 = inlined_call_operand.hbm [shape: f32[16,32], index: 0, kind: input, shape index: {}]   ;;  %s781_s1 = inlined_call_operand.hbm [shape: f32[32,128], index: 1, kind: input, shape index: {}]   ;;  %s782_s2 = inlined_call_operand.vmem [shape: f32[1,128], index: 2, kind: input, shape index: {}]   ;;  %s783_s3 = inlined_call_operand.vmem [shape: f32[16,3], index: 3, kind: output, shape index: {}]  }
   0x1   :  { %10 = vsyncpa [#allocation4 + $0x1], 0 }
   0x2   :  { %11 = vsyncpa [#allocation6], 0  ;;  %s656_s12 = smov 0   ;;  %s658_s13 = smov 0  }
   0x3   :  { %s660_s14 = smov 0   ;;  %s662_s15 = smov 0  }
   0x4   :  { %s664_s16 = smov 0   ;;  %s666_s17 = smov 0  }
   0x5 LB: > { %s417_s18 = sadd.s32 4294967295, %s628_s17   ;;  %p51_p0 = scmp.ne.s32.totalorder %s612_s13, %s608_s12  ;;  %s628_s17 = sphi %s666_s17, %s17_s17   ;;  %s624_s16 = sphi %s664_s16, %s793_s16   ;;  %s620_s15 = sphi %s662_s15, %s792_s15   ;;  %s616_s14 = sphi %s660_s14, %s791_s14   ;;  %s612_s13 = sphi %s658_s13, %s790_s13   ;;  %s608_s12 = sphi %s656_s12, %s789_s12  }
   0x6   : > { %p686_p1 = scmp.eq.s32.totalorder %s417_s18, 0  ;;  %p419_p2 = scmp.ge.s32.totalorder %s628_s17, 1 }
   0x7   : > { %p135_p3 = scmp.lt.s32.totalorder %s628_s17, 3  ;;  %s630_s22 = smov [#allocation5]  }
   0x8   : > { %p694_p4 = por %p686_p1, %p51_p0  ;;  %s150_s23 = sshll.u32 %s630_s22, 4  ;;  %s151_s23 = int_to_ptr.vmem [resolvable:$true] %s150_s23 }
   0x9   : > { %p698_p5 = pnand %p419_p2, %p135_p3  ;;  %s29_s25 = sadd.s32 1, %s624_s16 }
   0xa   : > { %s531_s26 = scalar_lea.vmem %s151_s23, 512  ;;  %p539_p12 = scmp.lt.s32.totalorder %s151_s23, %s151_s23 }
   0xb   : > { %p454_p6 = pneg %p698_p5  ;;  %p532_p9 = scmp.ne.s32.totalorder %s151_s23, %s531_s26 }
   0xc   : > { %p540_p13 = scmp.lt.s32.totalorder %s531_s26, %s531_s26 }
   0xd   : > { %p706_p7 = pnand %p454_p6, %p686_p1 }
   0xe   : > { %p541_p0 = por %p540_p13, %p539_p12 }
   0xf   : > { %p522_p8 = pneg %p706_p7 }
  0x11   : > { %p534_p10 = pnand %p532_p9, %p522_p8 }
  0x13   : > { %p535_p11 = pneg %p534_p10 }
  0x15   : > { %p542_p2 = pnand %p541_p0, %p535_p11 }
  0x17   : > { %545 = shalt.err (!%p542_p2)
}
  0x18   : > { %s631_s27 = smov 128   ;;  %s632_s28 = smov 8  }
  0x19   : > { %457 = dma.hbm_to_vmem [thread:$0]  (!%p706_p7), %s781_s1, 512, %s151_s23, [#allocation6], %s631_s27, %s631_s27, %s632_s28  }
  0x1a   : > { %p31_p3 = scmp.ge.s32.totalorder %s29_s25, 2  ;;  %s38_s4 = sadd.s32 1, %s616_s14 }
  0x1b   : > { %p45_p6 = scmp.ne.s32.totalorder %s616_s14, %s612_s13  ;;  %p46_p8 = scmp.eq.s32.totalorder %s628_s17, 0 }
  0x1c   : > { %s795_s25 = smov (%p31_p3, %s29_s25), 0  ;;  %p463_p10 = scmp.lt.s32.totalorder %s628_s17, 2 }
  0x1d   : > { %p47_p9 = por %p46_p8, %p45_p6  ;;  %s33_s5 = ssub.s32 %s624_s16, %s795_s25 }
  0x1e   : > { %s167_s6 = sand.u32 1, %s616_s14   ;;  %p36_p11 = scmp.eq.s32.totalorder %s33_s5, 0 }
  0x1f   : > { %s422_s7 = sshll.u32 %s167_s6, 3  ;;  %s423_s8 = sshll.u32 %s624_s16, 7 }
  0x20   : > { %s730_s9 = scalar_select %p36_p11, %s616_s14, %s38_s4  }
  0x21   : > { %s177_s12 = scalar_lea.hbm %s780_s0, %s423_s8  ;;  %s171_s18 = scalar_lea.vmem [#allocation3], %s422_s7 }
  0x22   : > { %s179_s22 = sshll.u32 %s171_s18, 4  ;;  %p735_p7 = pnand %p463_p10, %p47_p9  ;;  %s180_s22 = int_to_ptr.vmem [resolvable:$true] %s179_s22 }
  0x23   : > { %s168_s24 = scalar_lea.sflag [#allocation4], %s167_s6  ;;  %s559_s26 = scalar_lea.vmem %s180_s22, 128 }
  0x24   : > { %p548_p12 = pneg %p735_p7  ;;  %p560_p13 = scmp.ne.s32.totalorder %s180_s22, %s559_s26 }
  0x25   : > { %s633_s27 = smov [#allocation3]  }
  0x26   : > { %p562_p0 = pnand %p560_p13, %p548_p12  ;;  %s564_s28 = sshll.u32 %s633_s27, 4  ;;  %s565_s28 = int_to_ptr.vmem [resolvable:$false] %s564_s28 }
  0x27   : > { %s566_s29 = scalar_lea.vmem %s565_s28, 256  ;;  %p567_p3 = scmp.lt.s32.totalorder %s180_s22, %s565_s28 }
  0x28   : > { %p563_p2 = pneg %p562_p0  ;;  %p568_p6 = scmp.lt.s32.totalorder %s566_s29, %s559_s26 }
  0x2a   : > { %p569_p8 = por %p568_p6, %p567_p3 }
  0x2c   : > { %p570_p9 = pnand %p569_p8, %p563_p2 }
  0x2e   : > { %573 = shalt.err (!%p570_p9)
}
  0x2f   : > { %461 = dma.hbm_to_vmem [thread:$0]  (!%p735_p7), %s177_s12, 128, %s180_s22, %s168_s24  }
  0x30   : > { %188 = sbr.rel (%p698_p5) target bundleno = 274 (0x112), region = 32  ;;  %s190_s30 = sand.u32 (!%p698_p5), 1, %s612_s13  }
  0x31   : > { %s425_s4 = sshll.u32 (!%p698_p5), %s190_s30, 3  ;;  %s191_s5 = scalar_lea.sflag (!%p698_p5), [#allocation4], %s190_s30 }
  0x32   : > { %s194_s6 = scalar_lea.vmem (!%p698_p5), [#allocation3], %s425_s4 }
  0x35   : > { %599 = dma.done.wait (%p694_p4), %s191_s5, 128  }
  0x36   : > { %601 = vsyncadd (%p694_p4), %s191_s5, 4294967168 }
  0x37   : > { %603 = dma.done.wait (%p686_p1), [#allocation6], 512  }
  0x38   : > { %605 = vsyncadd (%p686_p1), [#allocation6], 4294966784  ;;  %v634_v0 = vmov 0.0   ;;  %vm635_vm0 = vmmov 0   ;;  %v240_v1 = vld [vmem:[#allocation5 + $0x18] sm:$0xff]  ;;  %v239_v2 = vld [vmem:[#allocation5 + $0x10] sm:$0xff] }
  0x39   : > { %437 = vmatprep.subr.mxu0 %v634_v0  ;;  %445 = vmatprep.mubr.msk.f32.mxu0 %vm635_vm0, %v634_v0  ;;  %v230_v3 = vld [vmem:[%s194_s6] sm:$0xff]  ;;  %v238_v4 = vld [vmem:[#allocation5 + $0x8] sm:$0xff]  ;;  %v237_v6 = vld [vmem:[#allocation5] sm:$0xff]  ;;  %vm241_vm1 = vcmask 261120   ;;  %p221_p1 = scmp.lt.s32.totalorder %s620_s15, 1  ;;  %vm329_vm2 = vcmask 23552  }
  0x3a   : > { %438 = vmatpush3.msra.mxu0 %v240_v1  ;;  %v232_v5 = vmul.f32 0.70710677, %v230_v3  ;;  %v231_v7 = vmul.f32 0.5, %v230_v3  ;;  %v429_v11 = vld [vmem:[%s782_s2] ss:$0 sm:$0xff] }
  0x3b   : > { %439 = vmatprep.subr.mxu0 %v634_v0  ;;  %s797_s15 = smov (!%p221_p1, %s620_s15), 1 }
  0x3c   : > { %440 = vmatpush3.msra.mxu0 %v239_v2  ;;  %518 = verf.f32 %v232_v5  ;;  %s427_s19 = sshll.u32 %s797_s15, 3 }
  0x3d   : > { %441 = vmatprep.subr.mxu0 %v634_v0  ;;  %s224_s10 = scalar_lea.vmem %s783_s3, %s427_s19 }
  0x3e   : > { %442 = vmatpush3.msra.mxu0 %v238_v4 }
  0x3f   : > { %443 = vmatprep.subr.mxu0 %v634_v0 }
  0x40   : > { %444 = vmatpush3.msra.mxu0 %v237_v6 }
  0x49   : > { %v519_v8 = vpop.eup %518 }
  0x4a   : > { %v234_v9 = vadd.f32 1.0, %v519_v8 }
  0x4c   : > { %v235_v10 = vmul.f32 %v234_v9, %v231_v7 }
  0x4e   : > { %446 = vmatmul.mubr.msk.f32.vlgmr.msra.gmra.mxu0 %vm241_vm1, %v235_v10 }
 0x10e   : > { %v311_v12 = vpop.f32.mrf.mxu0 }
 0x10f   : > { %v328_v13 = vadd.f32 %v429_v11, %v311_v12 }
 0x110   : > { %v447_v14 = vpop.f32.mrf.mxu0 }
 0x111   : > { %330 = vst.msk [vmem:[%s224_s10] sm:$0xff] %vm329_vm2, %v328_v13 }
 0x112 PF: > { %s17_s17 = sadd.s32 1, %s628_s17   ;;  %s789_s12 = smov %s612_s13 }
 0x113   : > { %p14_p4 = scmp.ge.s32.totalorder %s17_s17, 4   ;;  %s790_s13 = smov %s616_s14 }
 0x114   : > { %s791_s14 = smov %s730_s9  ;;  %s792_s15 = smov %s624_s16 }
 0x115   : > { %s793_s16 = smov %s795_s25  ;;  %16 = sbr.rel (!%p14_p4) target bundleno = 5 (0x5), region = 85 }
 0x11a   :  { %350 = vsyncpa [#allocation4], 1 }
 0x11b   :  { %352 = vsyncpa [#allocation4 + $0x1], 1 }
 0x11c   :  { %353 = vsyncpa [#allocation6], 1 }

</bundles_post_ra>
